<compile_context>
chip_gen: v7x
topology: tpu7x:2x2x1
jax: 0.10.0
libtpu: 0.0.40
codegen_flags: <defaults>
</compile_context>

<pallas_src>
import functools

import jax
import jax.numpy as jnp
from jax.experimental import pallas as pl
from jax.experimental.pallas import tpu as pltpu


def _round_up(n, m):
    return (n + m - 1) // m * m


# ------------------------------ fused Pallas kernel ------------------------------ #
def _fused_forward_kernel(win_ref, cw_ref, cb_ref, w1_ref, b1_ref,
                          w2_ref, b2_ref, w3_ref, b3_ref, o_ref, *, inv_n_win):
    # cnn: Conv1d as dense Toeplitz matmul (+bias, ReLU); output already channel-major flat
    conv = jnp.dot(win_ref[...], cw_ref[...], preferred_element_type=jnp.float32)
    conv = jnp.maximum(conv + cb_ref[...], 0.0)                      # (n_win, C*L_out)
    # mlp_1: Linear + ReLU
    h = jnp.dot(conv, w1_ref[...], preferred_element_type=jnp.float32)
    h = jnp.maximum(h + b1_ref[...], 0.0)                            # (n_win, h1)
    # mlp_2: Linear + ReLU, Linear
    h = jnp.dot(h, w2_ref[...], preferred_element_type=jnp.float32)
    h = jnp.maximum(h + b2_ref[...], 0.0)                            # (n_win, h2)
    out = jnp.dot(h, w3_ref[...], preferred_element_type=jnp.float32) + b3_ref[...]
    # eval-mode mean over windows folded into the epilogue (sublane reduction, lane-dense store)
    o_ref[...] = jnp.sum(out, axis=0, keepdims=True) * inv_n_win     # (1, out_pad)


# ----------------------------- parameter construction ---------------------------- #
def init_params(key, *, wlen, conv_ch, conv_k, h1, h2, out_dim):
    l_out = wlen - conv_k + 1
    cnn_flat = conv_ch * l_out
    ks = jax.random.split(key, 8)

    def dense(k, fan_in, shape):
        return jax.random.normal(k, shape, jnp.float32) / jnp.sqrt(jnp.float32(fan_in))

    return {
        # cnn: Conv1d(1, conv_ch, conv_k)
        "conv_w": dense(ks[0], conv_k, (conv_ch, 1, conv_k)),
        "conv_b": dense(ks[1], conv_k, (conv_ch,)),
        # mlp_1: Linear(cnn_flat, h1) + ReLU
        "fc1_w": dense(ks[2], cnn_flat, (cnn_flat, h1)),
        "fc1_b": dense(ks[3], cnn_flat, (h1,)),
        # mlp_2: Linear(h1, h2) + ReLU, Linear(h2, out_dim)   (fc_lay[-1] = out_dim)
        "fc2_w": dense(ks[4], h1, (h1, h2)),
        "fc2_b": dense(ks[5], h1, (h2,)),
        "fc3_w": dense(ks[6], h2, (h2, out_dim)),
        "fc3_b": dense(ks[7], h2, (out_dim,)),
    }


def prepare_params(params, *, wlen, lane_pad=128):
    """One-time preprocessing: build the Toeplitz conv matrix, reshape biases to (1,N),
    cast everything to f32, and zero-pad the last layer to a lane-dense width."""
    conv_w = params["conv_w"].astype(jnp.float32)            # (C, 1, K)
    conv_b = params["conv_b"].astype(jnp.float32)            # (C,)
    C, _, K = conv_w.shape
    L = wlen - K + 1
    w_ck = conv_w[:, 0, :]                                   # (C, K)

    # conv_w_eq[j, c*L + l] = w[c, j-l] for l <= j < l+K, else 0   -> conv == windows @ conv_w_eq
    col_c = jnp.repeat(jnp.arange(C), L)                     # (C*L,)
    col_l = jnp.tile(jnp.arange(L), C)                       # (C*L,)
    j = jnp.arange(wlen)[:, None]                            # (wlen, 1)
    k = j - col_l[None, :]                                   # (wlen, C*L)
    valid = (k >= 0) & (k < K)
    vals = w_ck[col_c[None, :], jnp.clip(k, 0, K - 1)]       # (wlen, C*L)
    conv_w_eq = jnp.where(valid, vals, 0.0).astype(jnp.float32)
    conv_b_eq = jnp.repeat(conv_b, L).reshape(1, C * L)      # channel-major flatten bias

    fc1_w = params["fc1_w"].astype(jnp.float32)
    fc1_b = params["fc1_b"].reshape(1, -1).astype(jnp.float32)
    fc2_w = params["fc2_w"].astype(jnp.float32)
    fc2_b = params["fc2_b"].reshape(1, -1).astype(jnp.float32)
    fc3_w = params["fc3_w"].astype(jnp.float32)
    fc3_b = params["fc3_b"].reshape(1, -1).astype(jnp.float32)

    out_dim = fc3_w.shape[1]
    out_pad = _round_up(max(out_dim, lane_pad), lane_pad)
    fc3_w_p = jnp.zeros((fc3_w.shape[0], out_pad), jnp.float32).at[:, :out_dim].set(fc3_w)
    fc3_b_p = jnp.zeros((1, out_pad), jnp.float32).at[:, :out_dim].set(fc3_b)

    return {
        "conv_w_eq": conv_w_eq, "conv_b_eq": conv_b_eq,
        "fc1_w": fc1_w, "fc1_b": fc1_b,
        "fc2_w": fc2_w, "fc2_b": fc2_b,
        "fc3_w": fc3_w_p, "fc3_b": fc3_b_p,
    }


# ------------------------------------ forward ------------------------------------ #
@functools.partial(jax.jit, static_argnames=("wlen", "wshift", "out_dim"))
def forward(prepared, x, *, wlen, wshift, out_dim):
    # x: (1, sig_len); eval-mode unfold -> (n_win, wlen)   (cheap gather glue)
    sig_len = x.shape[1]
    n_win = (sig_len - wlen) // wshift + 1
    idx = jnp.arange(n_win)[:, None] * wshift + jnp.arange(wlen)[None, :]
    windows = x[0][idx].astype(jnp.float32)                  # (n_win, wlen)

    out_pad = prepared["fc3_w"].shape[1]
    vmem_specs = [pl.BlockSpec(memory_space=pltpu.MemorySpace.VMEM) for _ in range(9)]

    out_padded = pl.pallas_call(
        functools.partial(_fused_forward_kernel, inv_n_win=1.0 / n_win),
        out_shape=jax.ShapeDtypeStruct((1, out_pad), jnp.float32),
        in_specs=vmem_specs,
        out_specs=pl.BlockSpec(memory_space=pltpu.MemorySpace.VMEM),
    )(windows,
      prepared["conv_w_eq"], prepared["conv_b_eq"],
      prepared["fc1_w"], prepared["fc1_b"],
      prepared["fc2_w"], prepared["fc2_b"],
      prepared["fc3_w"], prepared["fc3_b"])

    return out_padded[:, :out_dim]                           # (1, out_dim)


# ------------------------------- pure-JAX reference ------------------------------- #
def reference_forward(params, x, *, wlen, wshift):
    sig_len = x.shape[1]
    n_win = (sig_len - wlen) // wshift + 1
    idx = jnp.arange(n_win)[:, None] * wshift + jnp.arange(wlen)[None, :]
    windows = x[0][idx]                                      # (n_win, wlen)
    w = params["conv_w"][:, 0, :]                            # (C, K)
    C, K = w.shape
    L = wlen - K + 1
    cols = jnp.stack([windows[:, k:k + L] for k in range(K)], axis=-1)   # (n_win, L, K)
    conv = jnp.einsum("nlk,ck->ncl", cols, w) + params["conv_b"][None, :, None]
    conv = jnp.maximum(conv, 0.0).reshape(n_win, C * L)
    h = jnp.maximum(conv @ params["fc1_w"] + params["fc1_b"], 0.0)
    h = jnp.maximum(h @ params["fc2_w"] + params["fc2_b"], 0.0)
    out = h @ params["fc3_w"] + params["fc3_b"]
    return out.mean(0, keepdims=True)


# -------------------------------------- main -------------------------------------- #
if __name__ == "__main__":
    WLEN, WSHIFT = 32, 16
    SIG_LEN = 128
    CONV_CH, CONV_K = 8, 5
    H1, H2, OUT_DIM = 32, 32, 16

    key = jax.random.PRNGKey(0)
    kx, kp = jax.random.split(key)
    x = jax.random.normal(kx, (1, SIG_LEN), jnp.float32)

    params = init_params(kp, wlen=WLEN, conv_ch=CONV_CH, conv_k=CONV_K,
                         h1=H1, h2=H2, out_dim=OUT_DIM)
    prepared = prepare_params(params, wlen=WLEN)

    out = forward(prepared, x, wlen=WLEN, wshift=WSHIFT, out_dim=OUT_DIM)
    out = jax.block_until_ready(out)
    assert out.shape == (1, OUT_DIM), out.shape

    ref = reference_forward(params, x, wlen=WLEN, wshift=WSHIFT)
    assert jnp.allclose(out, ref, rtol=1e-2, atol=1e-3), (out, ref)

    print("KERNEL_OK")
</pallas_src>

<mosaic_0001>
module attributes {stable_mosaic.version = 11 : i64} {
  func.func @_fused_forward_kernel(%arg0: memref<7x32xf32, #tpu.memory_space<vmem>>, %arg1: memref<32x224xf32, #tpu.memory_space<vmem>>, %arg2: memref<1x224xf32, #tpu.memory_space<vmem>>, %arg3: memref<224x32xf32, #tpu.memory_space<vmem>>, %arg4: memref<1x32xf32, #tpu.memory_space<vmem>>, %arg5: memref<32x32xf32, #tpu.memory_space<vmem>>, %arg6: memref<1x32xf32, #tpu.memory_space<vmem>>, %arg7: memref<32x128xf32, #tpu.memory_space<vmem>>, %arg8: memref<1x128xf32, #tpu.memory_space<vmem>>, %arg9: memref<1x128xf32, #tpu.memory_space<vmem>>) attributes {dimension_semantics = [], scalar_prefetch = 0 : i64, scratch_operands = 0 : i64, tpu.core_type = #tpu.core_type<tc>} {
    %c0 = arith.constant 0 : index
    %c0_0 = arith.constant 0 : index
    %0 = vector.load %arg0[%c0, %c0_0] : memref<7x32xf32, #tpu.memory_space<vmem>>, vector<7x32xf32>
    %c0_1 = arith.constant 0 : index
    %c0_2 = arith.constant 0 : index
    %1 = vector.load %arg1[%c0_1, %c0_2] : memref<32x224xf32, #tpu.memory_space<vmem>>, vector<32x224xf32>
    %cst = arith.constant dense<0.000000e+00> : vector<7x224xf32>
    %2 = tpu.matmul %0, %1, %cst {dimension_numbers = #tpu.dot_dimension_numbers<[1], [0], [0], [1], [0, 0, 1, 1], [], []>} : vector<7x32xf32>, vector<32x224xf32>, vector<7x224xf32> -> vector<7x224xf32>
    %c0_3 = arith.constant 0 : index
    %c0_4 = arith.constant 0 : index
    %3 = vector.load %arg2[%c0_3, %c0_4] : memref<1x224xf32, #tpu.memory_space<vmem>>, vector<1x224xf32>
    %4 = vector.broadcast %3 : vector<1x224xf32> to vector<7x224xf32>
    %5 = arith.addf %2, %4 : vector<7x224xf32>
    %cst_5 = arith.constant 0.000000e+00 : f32
    %6 = vector.broadcast %cst_5 : f32 to vector<7x224xf32>
    %7 = arith.maximumf %5, %6 : vector<7x224xf32>
    %c0_6 = arith.constant 0 : index
    %c0_7 = arith.constant 0 : index
    %8 = vector.load %arg3[%c0_6, %c0_7] : memref<224x32xf32, #tpu.memory_space<vmem>>, vector<224x32xf32>
    %cst_8 = arith.constant dense<0.000000e+00> : vector<7x32xf32>
    %9 = tpu.matmul %7, %8, %cst_8 {dimension_numbers = #tpu.dot_dimension_numbers<[1], [0], [0], [1], [0, 0, 1, 1], [], []>} : vector<7x224xf32>, vector<224x32xf32>, vector<7x32xf32> -> vector<7x32xf32>
    %c0_9 = arith.constant 0 : index
    %c0_10 = arith.constant 0 : index
    %10 = vector.load %arg4[%c0_9, %c0_10] : memref<1x32xf32, #tpu.memory_space<vmem>>, vector<1x32xf32>
    %11 = vector.broadcast %10 : vector<1x32xf32> to vector<7x32xf32>
    %12 = arith.addf %9, %11 : vector<7x32xf32>
    %cst_11 = arith.constant 0.000000e+00 : f32
    %13 = vector.broadcast %cst_11 : f32 to vector<7x32xf32>
    %14 = arith.maximumf %12, %13 : vector<7x32xf32>
    %c0_12 = arith.constant 0 : index
    %c0_13 = arith.constant 0 : index
    %15 = vector.load %arg5[%c0_12, %c0_13] : memref<32x32xf32, #tpu.memory_space<vmem>>, vector<32x32xf32>
    %cst_14 = arith.constant dense<0.000000e+00> : vector<7x32xf32>
    %16 = tpu.matmul %14, %15, %cst_14 {dimension_numbers = #tpu.dot_dimension_numbers<[1], [0], [0], [1], [0, 0, 1, 1], [], []>} : vector<7x32xf32>, vector<32x32xf32>, vector<7x32xf32> -> vector<7x32xf32>
    %c0_15 = arith.constant 0 : index
    %c0_16 = arith.constant 0 : index
    %17 = vector.load %arg6[%c0_15, %c0_16] : memref<1x32xf32, #tpu.memory_space<vmem>>, vector<1x32xf32>
    %18 = vector.broadcast %17 : vector<1x32xf32> to vector<7x32xf32>
    %19 = arith.addf %16, %18 : vector<7x32xf32>
    %cst_17 = arith.constant 0.000000e+00 : f32
    %20 = vector.broadcast %cst_17 : f32 to vector<7x32xf32>
    %21 = arith.maximumf %19, %20 : vector<7x32xf32>
    %c0_18 = arith.constant 0 : index
    %c0_19 = arith.constant 0 : index
    %22 = vector.load %arg7[%c0_18, %c0_19] : memref<32x128xf32, #tpu.memory_space<vmem>>, vector<32x128xf32>
    %cst_20 = arith.constant dense<0.000000e+00> : vector<7x128xf32>
    %23 = tpu.matmul %21, %22, %cst_20 {dimension_numbers = #tpu.dot_dimension_numbers<[1], [0], [0], [1], [0, 0, 1, 1], [], []>} : vector<7x32xf32>, vector<32x128xf32>, vector<7x128xf32> -> vector<7x128xf32>
    %c0_21 = arith.constant 0 : index
    %c0_22 = arith.constant 0 : index
    %24 = vector.load %arg8[%c0_21, %c0_22] : memref<1x128xf32, #tpu.memory_space<vmem>>, vector<1x128xf32>
    %25 = vector.broadcast %24 : vector<1x128xf32> to vector<7x128xf32>
    %26 = arith.addf %23, %25 : vector<7x128xf32>
    %cst_23 = arith.constant dense<0.000000e+00> : vector<128xf32>
    %27 = vector.multi_reduction <add>, %26, %cst_23 [0] : vector<7x128xf32> to vector<128xf32>
    %28 = vector.shape_cast %27 : vector<128xf32> to vector<1x128xf32>
    %cst_24 = arith.constant 0.142857149 : f32
    %29 = vector.broadcast %cst_24 : f32 to vector<1x128xf32>
    %30 = arith.mulf %28, %29 : vector<1x128xf32>
    %c0_25 = arith.constant 0 : index
    %c0_26 = arith.constant 0 : index
    %31 = vector.load %arg9[%c0_25, %c0_26] : memref<1x128xf32, #tpu.memory_space<vmem>>, vector<1x128xf32>
    tpu.vector_store %arg9[%c0_25, %c0_26], %30 {strides = array<i32>} : memref<1x128xf32, #tpu.memory_space<vmem>>, vector<1x128xf32>,
    return
  }
}

</mosaic_0001>

<bundles_post_ra>
// kernel: forward.1
= control target key start
LH: loop header
LB: loop body
LE: loop exit
PB: predicated region body
PF: predicated region fallthrough
CT: control target
= control target key end

     0   :  { %v563_v7 = vmov 0.0   ;;  %v564_v8 = vmov 0.0|0.0   ;;  %vm54_vm0 = vcmask 261120   ;;  %s800_s0 = inlined_call_operand.vmem [shape: f32[7,32], index: 0, kind: input, shape index: {}]   ;;  %s801_s1 = inlined_call_operand.vmem [shape: f32[32,224], index: 1, kind: input, shape index: {}]   ;;  %s802_s2 = inlined_call_operand.vmem [shape: f32[1,224], index: 2, kind: input, shape index: {}]   ;;  %s803_s3 = inlined_call_operand.vmem [shape: f32[224,32], index: 3, kind: input, shape index: {}]   ;;  %s804_s4 = inlined_call_operand.vmem [shape: f32[1,32], index: 4, kind: input, shape index: {}]   ;;  %s805_s5 = inlined_call_operand.vmem [shape: f32[32,32], index: 5, kind: input, shape index: {}]   ;;  %s806_s6 = inlined_call_operand.vmem [shape: f32[1,32], index: 6, kind: input, shape index: {}]   ;;  %s807_s7 = inlined_call_operand.vmem [shape: f32[32,128], index: 7, kind: input, shape index: {}]   ;;  %s808_s8 = inlined_call_operand.vmem [shape: f32[1,128], index: 8, kind: input, shape index: {}]   ;;  %s809_s9 = inlined_call_operand.hbm [shape: f32[1,128], index: 9, kind: output, shape index: {}]  }
   0x1   :  { %v35_v0 = vld [vmem:[%s801_s1 + $0x8] sm:$0xff]  ;;  %v37_v1 = vld [vmem:[%s801_s1 + $0x18] sm:$0xff]  ;;  %v34_v2 = vld [vmem:[%s801_s1] sm:$0xff]  ;;  %122 = vmatprep.mubr.f32.mxu0 %v563_v7  ;;  %481 = vmatprep.subr.bf16.mxu1 %v564_v8 }
   0x2   :  { %v473_v3 = vpack.c.bf16 %v37_v1, %v35_v0  ;;  %v36_v4 = vld [vmem:[%s801_s1 + $0x10] sm:$0xff]  ;;  %v39_v5 = vld [vmem:[%s801_s1 + $0x28] sm:$0xff]  ;;  %v41_v6 = vld [vmem:[%s801_s1 + $0x38] sm:$0xff] }
   0x3   :  { %v475_v9 = vpack.c.bf16 %v36_v4, %v34_v2  ;;  %v477_v10 = vpack.c.bf16 %v41_v6, %v39_v5  ;;  %v38_v11 = vld [vmem:[%s801_s1 + $0x20] sm:$0xff]  ;;  %v40_v12 = vld [vmem:[%s801_s1 + $0x30] sm:$0xff]  ;;  %v132_v14 = vld [vmem:[%s803_s3 + $0x8] sm:$0xff] }
   0x4   :  { %474 = vmatprep.subr.bf16.mxu0 %v473_v3  ;;  %v131_v13 = vld [vmem:[%s803_s3] sm:$0xff]  ;;  %v133_v15 = vld [vmem:[%s803_s3 + $0x10] sm:$0xff]  ;;  %v479_v16 = vpack.c.bf16 %v40_v12, %v38_v11  ;;  %v134_v18 = vld [vmem:[%s803_s3 + $0x18] sm:$0xff] }
   0x5   :  { %476 = vmatpush1.bf16.msra.mxu0 %v475_v9  ;;  %v482_v17 = vpack.c.bf16 %v132_v14, %v131_v13  ;;  %v485_v19 = vpack.c.bf16 %v134_v18, %v133_v15  ;;  %v135_v20 = vld [vmem:[%s803_s3 + $0x20] sm:$0xff]  ;;  %v136_v21 = vld [vmem:[%s803_s3 + $0x28] sm:$0xff]  ;;  %v137_v24 = vld [vmem:[%s803_s3 + $0x30] sm:$0xff] }
   0x6   :  { %478 = vmatprep.subr.bf16.mxu0 %v477_v10  ;;  %v33_v22 = vld [vmem:[%s800_s0] sm:$0x7f]  ;;  %v488_v23 = vpack.c.bf16 %v136_v21, %v135_v20  ;;  %v138_v25 = vld [vmem:[%s803_s3 + $0x38] sm:$0xff] }
   0x7   :  { %483 = vmatpush1.bf16.msra.mxu1 %v482_v17 }
   0x8   :  { %484 = vmatprep.subr.bf16.mxu1 %v564_v8 }
   0x9   :  { %480 = vmatpush1.bf16.msra.mxu0 %v479_v16 }
   0xa   :  { %523 = vmatprep.subr.bf16.mxu0 %v564_v8 }
   0xb   :  { %486 = vmatpush1.bf16.msra.mxu1 %v485_v19 }
   0xc   :  { %434 = vmatmul.mubr.msk.f32.vlgmr.msra.gmra.mrb[0].mxu0 %vm54_vm0, %v33_v22  ;;  %487 = vmatprep.subr.bf16.mxu1 %v564_v8 }
   0xd   :  { %14 = vsyncpa [#allocation3], 0  ;;  %v491_v26 = vpack.c.bf16 %v138_v25, %v137_v24  ;;  %v139_v27 = vld [vmem:[%s803_s3 + $0x40] sm:$0xff]  ;;  %v140_v28 = vld [vmem:[%s803_s3 + $0x48] sm:$0xff]  ;;  %v44_v60 = vlaneseq  ;;  %vm166_vm1 = vcmask 785408   ;;  %vm565_vm2 = vmmov 0  }
   0xe   :  { %v494_v29 = vpack.c.bf16 %v140_v28, %v139_v27  ;;  %v141_v30 = vld [vmem:[%s803_s3 + $0x50] sm:$0xff]  ;;  %v142_v31 = vld [vmem:[%s803_s3 + $0x58] sm:$0xff]  ;;  %v143_v33 = vld [vmem:[%s803_s3 + $0x60] sm:$0xff]  ;;  %459 = vmatprep.mubr.msk.f32.mxu0 %vm565_vm2, %v563_v7  ;;  %vm410_vm3 = vcmask 1046528  }
   0xf   :  { %489 = vmatpush1.bf16.msra.mxu1 %v488_v23  ;;  %v497_v32 = vpack.c.bf16 %v142_v31, %v141_v30  ;;  %v144_v34 = vld [vmem:[%s803_s3 + $0x68] sm:$0xff]  ;;  %v145_v36 = vld [vmem:[%s803_s3 + $0x70] sm:$0xff]  ;;  %v146_v37 = vld [vmem:[%s803_s3 + $0x78] sm:$0xff]  ;;  %v45_v61 = vshrl.u32 %v44_v60, 7 }
  0x10   :  { %490 = vmatprep.subr.bf16.mxu1 %v564_v8  ;;  %v500_v35 = vpack.c.bf16 %v144_v34, %v143_v33  ;;  %v503_v38 = vpack.c.bf16 %v146_v37, %v145_v36  ;;  %v147_v39 = vld [vmem:[%s803_s3 + $0x80] sm:$0xff]  ;;  %v148_v40 = vld [vmem:[%s803_s3 + $0x88] sm:$0xff]  ;;  %v149_v42 = vld [vmem:[%s803_s3 + $0x90] sm:$0xff] }
  0x11   :  { %v506_v41 = vpack.c.bf16 %v148_v40, %v147_v39  ;;  %v150_v43 = vld [vmem:[%s803_s3 + $0x98] sm:$0xff]  ;;  %v151_v45 = vld [vmem:[%s803_s3 + $0xa0] sm:$0xff]  ;;  %v152_v46 = vld [vmem:[%s803_s3 + $0xa8] sm:$0xff]  ;;  %v46_v62 = vsub.s32 0, %v45_v61  ;;  %v50_v0 = vsub.s32 1, %v45_v61 }
  0x12   :  { %v509_v44 = vpack.c.bf16 %v150_v43, %v149_v42  ;;  %v512_v47 = vpack.c.bf16 %v152_v46, %v151_v45  ;;  %v153_v48 = vld [vmem:[%s803_s3 + $0xb0] sm:$0xff]  ;;  %v154_v49 = vld [vmem:[%s803_s3 + $0xb8] sm:$0xff]  ;;  %v155_v51 = vld [vmem:[%s803_s3 + $0xc0] sm:$0xff] }
  0x13   :  { %492 = vmatpush1.bf16.msra.mxu1 %v491_v26  ;;  %v515_v50 = vpack.c.bf16 %v154_v49, %v153_v48  ;;  %v156_v52 = vld [vmem:[%s803_s3 + $0xc8] sm:$0xff]  ;;  %v157_v54 = vld [vmem:[%s803_s3 + $0xd0] sm:$0xff]  ;;  %v158_v55 = vld [vmem:[%s803_s3 + $0xd8] sm:$0xff] }
  0x14   :  { %493 = vmatprep.subr.bf16.mxu1 %v564_v8  ;;  %v518_v53 = vpack.c.bf16 %v156_v52, %v155_v51  ;;  %v521_v56 = vpack.c.bf16 %v158_v55, %v157_v54  ;;  %v241_v57 = vld [vmem:[%s805_s5] sm:$0xff]  ;;  %v242_v58 = vld [vmem:[%s805_s5 + $0x8] sm:$0xff]  ;;  %v243_v11 = vld [vmem:[%s805_s5 + $0x10] sm:$0xff] }
  0x15   :  { %v524_v59 = vpack.c.bf16 %v242_v58, %v241_v57  ;;  %v42_v63 = vld [vmem:[%s802_s2] sm:$0x3]  ;;  %v244_v12 = vld [vmem:[%s805_s5 + $0x18] sm:$0xff]  ;;  %v327_v16 = vld [vmem:[%s807_s7 + $0x8] sm:$0xff] }
  0x16   :  { %v47_v1 = vrot.slane %v42_v63, %v46_v62  ;;  %v51_v2 = vrot.slane %v42_v63, %v50_v0  ;;  %v527_v13 = vpack.c.bf16 %v244_v12, %v243_v11  ;;  %v435_v14 = vld [vmem:[%s804_s4] ss:$0 sm:$0xff]  ;;  %v328_v22 = vld [vmem:[%s807_s7 + $0x10] sm:$0xff]  ;;  %v329_v23 = vld [vmem:[%s807_s7 + $0x18] sm:$0xff] }
  0x17   :  { %495 = vmatpush1.bf16.msra.mxu1 %v494_v29  ;;  %525 = vmatpush3.bf16.msra.mxu0 %v524_v59  ;;  %v326_v15 = vld [vmem:[%s807_s7] sm:$0xff]  ;;  %v533_v24 = vpack.c.bf16 %v329_v23, %v328_v22 }
  0x18   :  { %496 = vmatprep.subr.bf16.mxu1 %v564_v8  ;;  %526 = vmatprep.subr.bf16.mxu0 %v564_v8  ;;  %v530_v20 = vpack.c.bf16 %v327_v16, %v326_v15  ;;  %v437_v25 = vld [vmem:[%s806_s6] ss:$0 sm:$0xff]  ;;  %s566_s6 = smov [#allocation2]  }
  0x19   :  { %s426_s7 = sshll.u32 %s566_s6, 4  ;;  %s427_s7 = int_to_ptr.vmem [resolvable:$true] %s426_s7 }
  0x1a   :  { %s539_s12 = scalar_lea.vmem %s427_s7, 16  ;;  %s543_s13 = scalar_lea.vmem %s427_s7, 32 }
  0x1b   :  { %498 = vmatpush1.bf16.msra.mxu1 %v497_v32  ;;  %528 = vmatpush3.bf16.msra.mxu0 %v527_v13  ;;  %p540_p0 = scmp.ne.s32.totalorder %s427_s7, %s539_s12  ;;  %p544_p1 = scmp.lt.s32.totalorder %s427_s7, %s427_s7 }
  0x1c   :  { %499 = vmatprep.subr.bf16.mxu1 %v564_v8  ;;  %529 = vmatprep.subr.bf16.mxu0 %v564_v8  ;;  %p545_p2 = scmp.lt.s32.totalorder %s543_s13, %s539_s12 }
  0x1e   :  { %p546_p3 = por %p545_p2, %p544_p1 }
  0x1f   :  { %501 = vmatpush1.bf16.msra.mxu1 %v500_v35 }
  0x20   :  { %502 = vmatprep.subr.bf16.mxu1 %v564_v8  ;;  %p547_p4 = pnand %p546_p3, %p540_p0 }
  0x23   :  { %504 = vmatpush1.bf16.msra.mxu1 %v503_v38 }
  0x24   :  { %505 = vmatprep.subr.bf16.mxu1 %v564_v8 }
  0x27   :  { %507 = vmatpush1.bf16.msra.mxu1 %v506_v41 }
  0x28   :  { %508 = vmatprep.subr.bf16.mxu1 %v564_v8 }
  0x2b   :  { %510 = vmatpush1.bf16.msra.mxu1 %v509_v44 }
  0x2c   :  { %511 = vmatprep.subr.bf16.mxu1 %v564_v8 }
  0x2f   :  { %513 = vmatpush1.bf16.msra.mxu1 %v512_v47 }
  0x30   :  { %514 = vmatprep.subr.bf16.mxu1 %v564_v8 }
  0x33   :  { %516 = vmatpush1.bf16.msra.mxu1 %v515_v50 }
  0x34   :  { %517 = vmatprep.subr.bf16.mxu1 %v564_v8 }
  0x37   :  { %519 = vmatpush1.bf16.msra.mxu1 %v518_v53 }
  0x38   :  { %520 = vmatprep.subr.bf16.mxu1 %v564_v8 }
  0x3b   :  { %522 = vmatpush1.bf16.msra.mxu1 %v521_v56 }
  0xdf   :  { %v124_v3 = vpop.f32.mrb[0].mxu0 }
  0xe0   :  { %v125_v4 = vadd.f32 %v124_v3, %v47_v1  ;;  %v126_v5 = vpop.f32.mrb[1].mxu0 }
  0xe1   :  { %v127_v6 = vadd.f32 %v126_v5, %v51_v2 }
  0xe2   :  { %v129_v10 = vmax.f32 %v125_v4, 0.0 }
  0xe3   :  { %v130_v9 = vmax.f32 %v127_v6, 0.0 }
  0xe5   :  { %436 = vmatprep.mubr.msk.f32.mxu1 %vm166_vm1, %v130_v9 }
  0xe6   :  { %235 = vmatmul.mubr.f32.vlgmr.msra.gmra.mrb[0].mxu1 %v129_v10 }
 0x1b9   :  { %v236_v17 = vpop.f32.mrb[0].mxu1 }
 0x1ba   :  { %v237_v18 = vadd.f32 %v435_v14, %v236_v17  ;;  %v238_v19 = vpop.f32.mrb[1].mxu1 }
 0x1bc   :  { %v240_v21 = vmax.f32 %v237_v18, 0.0 }
 0x1be   :  { %460 = vmatmul.mubr.msk.f32.vlgmr.msra.gmra.mrb[2].mxu0 %vm54_vm0, %v240_v21 }
 0x1bf   :  { %531 = vmatpush3.bf16.msra.mxu0 %v530_v20  ;;  %470 = vmatprep.mubr.msk.f32.mxu0 %vm565_vm2, %v563_v7 }
 0x1c0   :  { %532 = vmatprep.subr.bf16.mxu0 %v564_v8  ;;  %v439_v8 = vld [vmem:[%s808_s8] ss:$0 sm:$0xff] }
 0x1c3   :  { %534 = vmatpush3.bf16.msra.mxu0 %v533_v24 }
 0x291   :  { %v321_v26 = vpop.f32.mrb[2].mxu0 }
 0x292   :  { %v322_v27 = vadd.f32 %v437_v25, %v321_v26  ;;  %v461_v28 = vpop.f32.mrb[3].mxu0 }
 0x294   :  { %v325_v7 = vmax.f32 %v322_v27, 0.0 }
 0x296   :  { %471 = vmatmul.mubr.msk.f32.vlgmr.msra.gmra.mrb[4].mxu0 %vm54_vm0, %v325_v7 }
 0x369   :  { %v406_v29 = vpop.f32.mrb[4].mxu0 }
 0x36a   :  { %v407_v30 = vadd.f32 %v439_v8, %v406_v29  ;;  %v472_v31 = vpop.f32.mrb[5].mxu0 }
 0x36c   :  { %v411_v32 = vsel %vm410_vm3, %v407_v30, 0.0 }
 0x36d   :  { %v412_v33 = vrot.slane %v411_v32, 4 }
 0x36f   :  { %v413_v34 = vadd.f32 %v412_v33, %v411_v32 }
 0x371   :  { %v414_v35 = vrot.slane %v413_v34, 2 }
 0x373   :  { %v415_v36 = vadd.f32 %v414_v35, %v413_v34 }
 0x375   :  { %v416_v37 = vrot.slane %v415_v36, 1 }
 0x377   :  { %v417_v38 = vadd.f32 %v416_v37, %v415_v36 }
 0x379   :  { %v418_v39 = vmul.f32 0.14285715, %v417_v38 }
 0x37b   :  { %419 = vst [vmem:[#allocation2] sm:$0x1] %v418_v39 }
 0x37c   :  { %550 = shalt.err (!%p547_p4)
}
 0x37d   :  { %s551_s15 = scalar_lea.hbm %s809_s9, 16 }
 0x37e   :  { %p552_p5 = scmp.ne.s32.totalorder %s809_s9, %s551_s15  ;;  %p555_p6 = scmp.lt.u32.totalorder %s551_s15, %s809_s9 }
 0x380   :  { %p557_p7 = pnand %p555_p6, %p552_p5 }
 0x382   :  { %560 = shalt.err (!%p557_p7)
}
 0x383   :  { %429 = dma.vmem_to_hbm [thread:$0]  %s427_s7, 16, %s809_s9, [#allocation3]  }
 0x384   :  { %561 = dma.done.wait [#allocation3], 16  }
 0x385   :  { %562 = vsyncadd [#allocation3], 4294967280 }
 0x386   :  { %433 = vsyncpa [#allocation3], 1 }

</bundles_post_ra>
